<compile_context>
chip_gen: v7x
topology: tpu7x:2x2x1
jax: 0.10.0
libtpu: 0.0.40
codegen_flags: <defaults>
</compile_context>

<pallas_src>
import functools

import jax
import jax.numpy as jnp
from jax import lax
from jax.experimental import pallas as pl
from jax.experimental.pallas import tpu as pltpu


def _round_up(a, b):
    return (a + b - 1) // b * b


def _sublayer_kernel(seed_ref, x_ref, w_ref, b_ref, o_ref, *, drop_p, tm, hp):
    """Fused linear -> dropout -> residual add on one (tm, hp) row tile."""
    x = x_ref[...]                                            # (tm, hp) f32
    # MXU matmul in bf16 with f32 accumulation (W^T already bf16 and VMEM-resident).
    y = jnp.dot(x.astype(jnp.bfloat16), w_ref[...],
                preferred_element_type=jnp.float32)
    y = y + b_ref[...]                                        # (1, hp) broadcast over rows

    if drop_p >= 1.0:                                         # static branch
        y = jnp.zeros_like(y)
    elif drop_p > 0.0:
        # Counter-based hash PRNG: deterministic per (seed, global element index),
        # pure 32-bit integer VPU ops (portable to interpret mode), and automatically
        # decorrelated across row tiles because the global row index includes program_id.
        i = pl.program_id(0)
        row = lax.broadcasted_iota(jnp.int32, (tm, hp), 0) + i * tm
        col = lax.broadcasted_iota(jnp.int32, (tm, hp), 1)
        idx = (row * hp + col).astype(jnp.uint32)
        s = seed_ref[0].astype(jnp.uint32)
        h = idx * jnp.uint32(0x9E3779B9) + s * jnp.uint32(0x85EBCA6B)
        h = h ^ (h >> 16)
        h = h * jnp.uint32(0x7FEB352D)
        h = h ^ (h >> 15)
        h = h * jnp.uint32(0x846CA68B)
        h = h ^ (h >> 16)
        thr = jnp.uint32(min(int(drop_p * float(2 ** 32)), 2 ** 32 - 1))  # drop if h < thr
        scale = jnp.float32(1.0 / (1.0 - drop_p))
        y = jnp.where(h >= thr, y * scale, jnp.float32(0.0))

    o_ref[...] = (x + y).astype(o_ref.dtype)


@functools.partial(jax.jit, static_argnames=("drop_p", "tm_max"))
def sublayer_forward(x, w, b, seed, drop_p, tm_max=512):
    """x: (B, S, H) f32.  w: (H, H) PyTorch nn.Linear weight (out, in).  b: (H,).
    seed: int32 array of shape (1,).  Returns x + dropout(x @ w.T + b)."""
    B, S, H = x.shape
    R = B * S

    # Lane-dense layout: pad hidden dim to a multiple of 128; pad rows up to the tile.
    Hp = _round_up(H, 128)
    Rp = _round_up(R, 8)
    TM = min(tm_max, Rp)          # keep tile modest so it also fits v7x's 64 MiB VMEM
    Rp = _round_up(Rp, TM)

    x2 = jnp.pad(x.reshape(R, H).astype(jnp.float32), ((0, Rp - R), (0, Hp - H)))
    wt = jnp.pad(w.T, ((0, Hp - H), (0, Hp - H))).astype(jnp.bfloat16)   # (Hp, Hp) = W^T
    b2 = jnp.pad(b.astype(jnp.float32), (0, Hp - H)).reshape(1, Hp)
    seed = jnp.asarray(seed, dtype=jnp.int32).reshape(1)

    kernel = functools.partial(_sublayer_kernel, drop_p=float(drop_p), tm=TM, hp=Hp)
    cost = pl.CostEstimate(
        flops=2 * Rp * Hp * Hp,
        transcendentals=0,
        bytes_accessed=2 * Rp * Hp * 4 + Hp * Hp * 2 + Hp * 4,
    )

    out = pl.pallas_call(
        kernel,
        out_shape=jax.ShapeDtypeStruct((Rp, Hp), jnp.float32),
        grid_spec=pltpu.PrefetchScalarGridSpec(
            num_scalar_prefetch=1,                              # seed lands in SMEM
            grid=(Rp // TM,),
            in_specs=[
                pl.BlockSpec((TM, Hp), lambda i, s: (i, 0)),    # x row tile (pipelined)
                pl.BlockSpec((Hp, Hp), lambda i, s: (0, 0)),    # W^T, VMEM-resident
                pl.BlockSpec((1, Hp), lambda i, s: (0, 0)),     # bias, VMEM-resident
            ],
            out_specs=pl.BlockSpec((TM, Hp), lambda i, s: (i, 0)),
        ),
        compiler_params=pltpu.CompilerParams(
            dimension_semantics=("parallel",),                  # shard row tiles across TCs
            vmem_limit_bytes=32 * 1024 * 1024,
        ),
        cost_estimate=cost,
        input_output_aliases={1: 0},                            # alias x2 buffer -> output
    )(seed, x2, wt, b2)

    return out[:R, :H].reshape(B, S, H)


if __name__ == "__main__":
    B, S, H = 2, 8, 32
    drop_p = 0.1

    key = jax.random.PRNGKey(0)
    kx, kw, kb = jax.random.split(key, 3)

    x = jax.random.normal(kx, (B, S, H), dtype=jnp.float32)
    # PyTorch nn.Linear-style init: U(-1/sqrt(H), 1/sqrt(H))
    bound = 1.0 / (H ** 0.5)
    W = jax.random.uniform(kw, (H, H), minval=-bound, maxval=bound, dtype=jnp.float32)
    b = jax.random.uniform(kb, (H,), minval=-bound, maxval=bound, dtype=jnp.float32)
    seed = jnp.array([1234], dtype=jnp.int32)

    out = sublayer_forward(x, W, b, seed, drop_p=drop_p)
    out = jax.block_until_ready(out)
    assert out.shape == (B, S, H) and out.dtype == jnp.float32

    # TODO(synk): dropout uses a hash-based counter PRNG, not torch's Philox stream;
    # the semantics (zero w.p. p, scale by 1/(1-p)) match, exact mask values do not.
    print("KERNEL_OK")
</pallas_src>

<mosaic_0001>
module attributes {stable_mosaic.version = 11 : i64} {
  func.func @_sublayer_kernel(%arg0: i32, %arg1: memref<1xi32, #tpu.memory_space<smem>>, %arg2: memref<16x128xf32, #tpu.memory_space<vmem>>, %arg3: memref<128x128xbf16, #tpu.memory_space<vmem>>, %arg4: memref<1x128xf32, #tpu.memory_space<vmem>>, %arg5: memref<16x128xf32, #tpu.memory_space<vmem>>) attributes {dimension_semantics = [#tpu.dimension_semantics<parallel>], iteration_bounds = array<i64: 1>, scalar_prefetch = 1 : i64, scratch_operands = 0 : i64, tpu.core_type = #tpu.core_type<tc>, window_params = [{transform_indices = @transform_0, window_bounds = array<i64: 16, 128>}, {pipeline_mode = #tpu.pipeline_mode<synchronous>, transform_indices = @transform_1, window_bounds = array<i64: 128, 128>}, {pipeline_mode = #tpu.pipeline_mode<synchronous>, transform_indices = @transform_2, window_bounds = array<i64: 1, 128>}, {transform_indices = @transform_3, window_bounds = array<i64: 16, 128>}]} {
    %c0 = arith.constant 0 : index
    %c0_0 = arith.constant 0 : index
    %0 = vector.load %arg2[%c0, %c0_0] : memref<16x128xf32, #tpu.memory_space<vmem>>, vector<16x128xf32>
    %1 = arith.truncf %0 : vector<16x128xf32> to vector<16x128xbf16>
    %c0_1 = arith.constant 0 : index
    %c0_2 = arith.constant 0 : index
    %2 = vector.load %arg3[%c0_1, %c0_2] : memref<128x128xbf16, #tpu.memory_space<vmem>>, vector<128x128xbf16>
    %cst = arith.constant dense<0.000000e+00> : vector<16x128xf32>
    %3 = tpu.matmul %1, %2, %cst {dimension_numbers = #tpu.dot_dimension_numbers<[1], [0], [0], [1], [0, 0, 1, 1], [], []>} : vector<16x128xbf16>, vector<128x128xbf16>, vector<16x128xf32> -> vector<16x128xf32>
    %c0_3 = arith.constant 0 : index
    %c0_4 = arith.constant 0 : index
    %4 = vector.load %arg4[%c0_3, %c0_4] : memref<1x128xf32, #tpu.memory_space<vmem>>, vector<1x128xf32>
    %5 = vector.broadcast %4 : vector<1x128xf32> to vector<16x128xf32>
    %6 = arith.addf %3, %5 : vector<16x128xf32>
    %7 = tpu.iota {dimensions = array<i32: 0>} : vector<16x128xi32>
    %c16_i32 = arith.constant 16 : i32
    %8 = arith.muli %arg0, %c16_i32 : i32
    %9 = vector.broadcast %8 : i32 to vector<16x128xi32>
    %10 = arith.addi %7, %9 : vector<16x128xi32>
    %11 = tpu.iota {dimensions = array<i32: 1>} : vector<16x128xi32>
    %c128_i32 = arith.constant 128 : i32
    %12 = vector.broadcast %c128_i32 : i32 to vector<16x128xi32>
    %13 = arith.muli %10, %12 : vector<16x128xi32>
    %14 = arith.addi %13, %11 : vector<16x128xi32>
    %c0_5 = arith.constant 0 : index
    %15 = memref.load %arg1[%c0_5] : memref<1xi32, #tpu.memory_space<smem>>
    %c-1640531527_i32 = arith.constant -1640531527 : i32
    %16 = vector.broadcast %c-1640531527_i32 : i32 to vector<16x128xi32>
    %17 = arith.muli %14, %16 : vector<16x128xi32>
    %c-2048144789_i32 = arith.constant -2048144789 : i32
    %18 = arith.muli %15, %c-2048144789_i32 : i32
    %19 = vector.broadcast %18 : i32 to vector<16x128xi32>
    %20 = arith.addi %17, %19 : vector<16x128xi32>
    %c16_i32_6 = arith.constant 16 : i32
    %21 = vector.broadcast %c16_i32_6 : i32 to vector<16x128xi32>
    %22 = arith.shrui %20, %21 : vector<16x128xi32>
    %23 = arith.xori %20, %22 : vector<16x128xi32>
    %c2146121005_i32 = arith.constant 2146121005 : i32
    %24 = vector.broadcast %c2146121005_i32 : i32 to vector<16x128xi32>
    %25 = arith.muli %23, %24 : vector<16x128xi32>
    %c15_i32 = arith.constant 15 : i32
    %26 = vector.broadcast %c15_i32 : i32 to vector<16x128xi32>
    %27 = arith.shrui %25, %26 : vector<16x128xi32>
    %28 = arith.xori %25, %27 : vector<16x128xi32>
    %c-2073254261_i32 = arith.constant -2073254261 : i32
    %29 = vector.broadcast %c-2073254261_i32 : i32 to vector<16x128xi32>
    %30 = arith.muli %28, %29 : vector<16x128xi32>
    %c16_i32_7 = arith.constant 16 : i32
    %31 = vector.broadcast %c16_i32_7 : i32 to vector<16x128xi32>
    %32 = arith.shrui %30, %31 : vector<16x128xi32>
    %33 = arith.xori %30, %32 : vector<16x128xi32>
    %c429496729_i32 = arith.constant 429496729 : i32
    %34 = vector.broadcast %c429496729_i32 : i32 to vector<16x128xi32>
    %35 = arith.cmpi uge, %33, %34 : vector<16x128xi32>
    %cst_8 = arith.constant 1.11111116 : f32
    %36 = vector.broadcast %cst_8 : f32 to vector<16x128xf32>
    %37 = arith.mulf %6, %36 : vector<16x128xf32>
    %cst_9 = arith.constant 0.000000e+00 : f32
    %38 = vector.broadcast %cst_9 : f32 to vector<16x128xf32>
    %39 = arith.select %35, %37, %38 : vector<16x128xi1>, vector<16x128xf32>
    %40 = arith.addf %0, %39 : vector<16x128xf32>
    %c0_10 = arith.constant 0 : index
    %c0_11 = arith.constant 0 : index
    %41 = vector.load %arg5[%c0_10, %c0_11] : memref<16x128xf32, #tpu.memory_space<vmem>>, vector<16x128xf32>
    tpu.vector_store %arg5[%c0_10, %c0_11], %40 {strides = array<i32>} : memref<16x128xf32, #tpu.memory_space<vmem>>, vector<16x128xf32>,
    return
  }
  func.func @transform_0(%arg0: i32, %arg1: memref<1xi32, #tpu.memory_space<smem>>) -> (i32, i32) {
    %c0_i32 = arith.constant 0 : i32
    %c0_i32_0 = arith.constant 0 : i32
    return %arg0, %c0_i32 : i32, i32
  }
  func.func @transform_1(%arg0: i32, %arg1: memref<1xi32, #tpu.memory_space<smem>>) -> (i32, i32) {
    %c0_i32 = arith.constant 0 : i32
    %c0_i32_0 = arith.constant 0 : i32
    %c0_i32_1 = arith.constant 0 : i32
    return %c0_i32, %c0_i32_0 : i32, i32
  }
  func.func @transform_2(%arg0: i32, %arg1: memref<1xi32, #tpu.memory_space<smem>>) -> (i32, i32) {
    %c0_i32 = arith.constant 0 : i32
    %c0_i32_0 = arith.constant 0 : i32
    %c0_i32_1 = arith.constant 0 : i32
    return %c0_i32, %c0_i32_0 : i32, i32
  }
  func.func @transform_3(%arg0: i32, %arg1: memref<1xi32, #tpu.memory_space<smem>>) -> (i32, i32) {
    %c0_i32 = arith.constant 0 : i32
    %c0_i32_0 = arith.constant 0 : i32
    return %arg0, %c0_i32 : i32, i32
  }
}

</mosaic_0001>

<bundles_post_ra>
// kernel: sublayer_forward.1
= control target key start
LH: loop header
LB: loop body
LE: loop exit
PB: predicated region body
PF: predicated region fallthrough
CT: control target
= control target key end

     0   :  { %v230_v0 = vmov 0.0   ;;  %vm231_vm0 = vmmov 0   ;;  %v132_v12 = vlaneseq  ;;  %s299_s2 = inlined_call_operand.vmem [shape: bf16[128,128], index: 2, kind: input, shape index: {}]   ;;  %s300_s1 = inlined_call_operand.vmem [shape: f32[16,128], index: 1, kind: input, shape index: {}, may-alias: {1,4}]   ;;  %s301_s0 = inlined_call_operand.<no memory space> [shape: s32[1], index: 0, kind: input, shape index: {}]   ;;  %s302_s3 = inlined_call_operand.vmem [shape: f32[1,128], index: 3, kind: input, shape index: {}]   ;;  %s303_s4 = inlined_call_operand.vmem [shape: f32[16,128], index: 4, kind: output, shape index: {}, may-alias: {1,4}]  }
   0x1   :  { %200 = vmatprep.subr.bf16.mxu0 %v230_v0  ;;  %v222_v1 = vld [vmem:[%s299_s2] sm:$0xff]   ;;  %216 = vmatprep.mubr.msk.bf16.mxu0 %vm231_vm0, %v230_v0  ;;  %v223_v2 = vld [vmem:[%s299_s2 + $0x8] sm:$0xff]   ;;  %v224_v3 = vld [vmem:[%s299_s2 + $0x10] sm:$0xff]   ;;  %s148_s10 = smul.u32 2246822507, %s301_s0 }
   0x2   :  { %201 = vmatpush3.bf16.msra.mxu0 %v222_v1  ;;  %v225_v4 = vld [vmem:[%s299_s2 + $0x18] sm:$0xff]   ;;  %v226_v5 = vld [vmem:[%s299_s2 + $0x20] sm:$0xff]   ;;  %v227_v6 = vld [vmem:[%s299_s2 + $0x28] sm:$0xff]   ;;  %v133_v13 = vshrl.u32 %v132_v12, 7  ;;  %v140_v15 = vand.u32 127, %v132_v12 }
   0x3   :  { %202 = vmatprep.subr.bf16.mxu0 %v230_v0  ;;  %v228_v7 = vld [vmem:[%s299_s2 + $0x30] sm:$0xff]   ;;  %v229_v8 = vld [vmem:[%s299_s2 + $0x38] sm:$0xff]   ;;  %v17_v9 = vld [vmem:[%s300_s1] sm:$0xff]  ;;  %v149_v21 = vstv %s148_s10 }
   0x4   :  { %v18_v10 = vld [vmem:[%s300_s1 + $0x8] sm:$0xff]  ;;  %v134_v14 = vadd.s32 8, %v133_v13  ;;  %v141_v16 = vmul.u32 128, %v133_v13  ;;  %v182_v39 = vld [vmem:[%s302_s3] ss:$0 sm:$0xff] }
   0x5   :  { %v19_v11 = vpack.c.bf16 %v18_v10, %v17_v9 }
   0x6   :  { %203 = vmatpush3.bf16.msra.mxu0 %v223_v2  ;;  %v142_v17 = vmul.u32 128, %v134_v14  ;;  %v143_v18 = vadd.s32 %v141_v16, %v140_v15 }
   0x7   :  { %204 = vmatprep.subr.bf16.mxu0 %v230_v0 }
   0x8   :  { %v144_v19 = vadd.s32 %v142_v17, %v140_v15  ;;  %v146_v20 = vmul.u32 2654435769, %v143_v18 }
   0xa   :  { %205 = vmatpush3.bf16.msra.mxu0 %v224_v3  ;;  %v147_v22 = vmul.u32 2654435769, %v144_v19  ;;  %v150_v23 = vadd.s32 %v149_v21, %v146_v20 }
   0xb   :  { %206 = vmatprep.subr.bf16.mxu0 %v230_v0 }
   0xc   :  { %v151_v24 = vadd.s32 %v149_v21, %v147_v22  ;;  %v152_v25 = vshrl.u32 %v150_v23, 16 }
   0xe   :  { %207 = vmatpush3.bf16.msra.mxu0 %v225_v4  ;;  %v153_v26 = vshrl.u32 %v151_v24, 16  ;;  %v154_v27 = vxor.u32 %v152_v25, %v150_v23 }
   0xf   :  { %208 = vmatprep.subr.bf16.mxu0 %v230_v0 }
  0x10   :  { %v155_v28 = vxor.u32 %v153_v26, %v151_v24  ;;  %v156_v29 = vmul.u32 2146121005, %v154_v27 }
  0x12   :  { %209 = vmatpush3.bf16.msra.mxu0 %v226_v5  ;;  %v157_v30 = vmul.u32 2146121005, %v155_v28  ;;  %v158_v31 = vshrl.u32 %v156_v29, 15 }
  0x13   :  { %210 = vmatprep.subr.bf16.mxu0 %v230_v0 }
  0x14   :  { %v159_v32 = vshrl.u32 %v157_v30, 15  ;;  %v160_v33 = vxor.u32 %v158_v31, %v156_v29 }
  0x16   :  { %211 = vmatpush3.bf16.msra.mxu0 %v227_v6  ;;  %v161_v34 = vxor.u32 %v159_v32, %v157_v30  ;;  %v162_v35 = vmul.u32 2221713035, %v160_v33 }
  0x17   :  { %212 = vmatprep.subr.bf16.mxu0 %v230_v0 }
  0x18   :  { %v163_v36 = vmul.u32 2221713035, %v161_v34  ;;  %v164_v37 = vshrl.u32 %v162_v35, 16 }
  0x1a   :  { %213 = vmatpush3.bf16.msra.mxu0 %v228_v7  ;;  %v165_v38 = vshrl.u32 %v163_v36, 16  ;;  %v166_v40 = vxor.u32 %v164_v37, %v162_v35 }
  0x1b   :  { %214 = vmatprep.subr.bf16.mxu0 %v230_v0 }
  0x1c   :  { %v167_v42 = vxor.u32 %v165_v38, %v163_v36  ;;  %vm168_vm1 = vcmp.ge.u32.totalorder %v166_v40, 429496729 }
  0x1e   :  { %215 = vmatpush3.bf16.msra.mxu0 %v229_v8  ;;  %vm169_vm2 = vcmp.ge.u32.totalorder %v167_v42, 429496729 }
  0x21   :  { %217 = vmatmul.mubr.bf16.vlgmr.msra.gmra.mrb[0].mxu0 %v19_v11 }
  0xf4   :  { %v125_v41 = vpop.f32.mrb[0].mxu0 }
  0xf5   :  { %v126_v43 = vadd.f32 %v182_v39, %v125_v41  ;;  %v218_v44 = vpop.f32.mrb[1].mxu0 }
  0xf6   :  { %v128_v45 = vpop.f32.mrb[2].mxu0 }
  0xf7   :  { %v170_v46 = vmul.f32 1.1111112, %v126_v43  ;;  %v129_v47 = vadd.f32 %v182_v39, %v128_v45  ;;  %v219_v48 = vpop.f32.mrb[3].mxu0 }
  0xf9   :  { %v172_v49 = vsel %vm168_vm1, %v170_v46, 0.0  ;;  %v171_v50 = vmul.f32 1.1111112, %v129_v47 }
  0xfa   :  { %v174_v51 = vadd.f32 %v172_v49, %v17_v9 }
  0xfb   :  { %v173_v52 = vsel %vm169_vm2, %v171_v50, 0.0 }
  0xfc   :  { %176 = vst [vmem:[%s303_s4] sm:$0xff] %v174_v51  ;;  %v175_v53 = vadd.f32 %v173_v52, %v18_v10 }
  0xfe   :  { %177 = vst [vmem:[%s303_s4 + $0x8] sm:$0xff] %v175_v53 }

</bundles_post_ra>
